<compile_context>
chip_gen: v5e
topology: v5e:2x2
jax: 0.10.0
libtpu: 0.0.40
codegen_flags: <defaults>
</compile_context>

<pallas_src>
import functools

import jax
import jax.numpy as jnp
from jax import lax
from jax.experimental import pallas as pl
from jax.experimental.pallas import tpu as pltpu


def _centerloss_kernel(x_ref, label_ref, center_ref, lam_ref, out_ref,
                       acc_ref, cnt_ref, csq_ref, *, n_total):
    i = pl.program_id(0)
    n_tiles = pl.num_programs(0)

    x_nat = x_ref[...]                      # (TN, D), native dtype
    c_nat = center_ref[...]                 # (C, D),  native dtype (resident)
    labels = label_ref[...]                 # (TN, 1) int32
    tile_n = x_nat.shape[0]
    c_num = c_nat.shape[0]

    @pl.when(i == 0)
    def _init():
        # ||center_j||^2 computed once, reused by every batch tile.
        # (1, D) x (C, D)^T on the MXU keeps the (1, C) result lane-dense
        # (no cross-lane transpose of a column reduction).
        c32 = c_nat.astype(jnp.float32)
        ones_row = jnp.ones((1, c32.shape[1]), jnp.float32)
        csq_ref[...] = lax.dot_general(
            ones_row, c32 * c32, (((1,), (1,)), ((), ())),
            preferred_element_type=jnp.float32)                # (1, C)
        acc_ref[...] = jnp.zeros_like(acc_ref)
        cnt_ref[...] = jnp.zeros_like(cnt_ref)

    # Mask rows that fall past the true batch size (padded last tile).
    row_ids = lax.broadcasted_iota(jnp.int32, (tile_n, 1), 0) + i * tile_n
    valid = row_ids < n_total                                  # (TN, 1)

    # one_hot[r, j] = (label_r == j), zeroed on padded rows.
    class_ids = lax.broadcasted_iota(jnp.int32, (tile_n, c_num), 1)
    one_hot = jnp.logical_and(labels == class_ids, valid).astype(jnp.float32)

    # S = x @ center^T : MXU contraction over D with f32 accumulation.
    s = lax.dot_general(x_nat, c_nat, (((1,), (1,)), ((), ())),
                        preferred_element_type=jnp.float32)    # (TN, C)

    x32 = x_nat.astype(jnp.float32)
    x_norm = jnp.sum(x32 * x32, axis=1, keepdims=True)         # (TN, 1)
    sel = jnp.sum(one_hot * (csq_ref[...] - 2.0 * s),
                  axis=1, keepdims=True)                       # (TN, 1)
    sq = jnp.where(valid, x_norm + sel, 0.0)                   # (TN, 1)

    # Per-class accumulation: the divide by the (global) class count is
    # deferred to the final grid step, so tiling keeps histc semantics exact.
    acc_ref[...] += jnp.sum(one_hot * sq, axis=0, keepdims=True)   # (1, C)
    cnt_ref[...] += jnp.sum(one_hot, axis=0, keepdims=True)        # (1, C)

    @pl.when(i == n_tiles - 1)
    def _finalize():
        cnt = cnt_ref[...]
        # Exact divide (runs once on a (1, C) row; classes with zero count
        # contribute nothing, matching a sum over present samples only).
        per_class = jnp.where(cnt > 0.0, acc_ref[...] / cnt, 0.0)
        d = jnp.sum(per_class) / jnp.float32(c_num)
        out_ref[0, 0] = 0.5 * lam_ref[0] * d


def centerloss(x, center, label, lambdas, *, tile_n=None,
               input_dtype=jnp.float32):
    """x: (N, D), center: (C, D), label: (N,) int in [0, C-1], lambdas scalar.

    input_dtype: HBM/MXU dtype for x and center. float32 (default) matches
    the reference tightly; bfloat16 halves HBM bytes and uses the bf16-native
    MXU on v6e/v7x (use a looser tolerance vs an f32 reference).
    """
    n, d = x.shape
    c_num = center.shape[0]

    if tile_n is None:
        # Big enough to amortize per-grid-step overhead, small enough that the
        # double-buffered x tile + resident center + (TN, C) temporaries stay
        # well under scoped VMEM on v5e/v6e and v7x's smaller 64 MiB VMEM.
        tile_n = 512
    tile_n = max(8, (min(int(tile_n), pl.next_power_of_2(n)) // 8) * 8)
    num_tiles = pl.cdiv(n, tile_n)

    x = x.astype(input_dtype)
    center = center.astype(input_dtype)
    label2d = label.astype(jnp.int32).reshape(n, 1)
    lam = jnp.asarray(lambdas, jnp.float32).reshape(1)

    kernel = functools.partial(_centerloss_kernel, n_total=n)

    itemsize = jnp.dtype(input_dtype).itemsize
    cost = pl.CostEstimate(
        flops=2 * n * c_num * d + 4 * n * d + 8 * n * c_num,
        transcendentals=0,
        bytes_accessed=(n * d + c_num * d) * itemsize + n * 4 + 8,
    )

    out = pl.pallas_call(
        kernel,
        out_shape=jax.ShapeDtypeStruct((1, 1), jnp.float32),
        grid_spec=pltpu.PrefetchScalarGridSpec(
            num_scalar_prefetch=0,
            grid=(num_tiles,),
            in_specs=[
                pl.BlockSpec((tile_n, d), lambda i: (i, 0)),        # x tile
                pl.BlockSpec((tile_n, 1), lambda i: (i, 0)),        # label tile
                pl.BlockSpec((c_num, d), lambda i: (0, 0)),         # center (resident)
                pl.BlockSpec(memory_space=pltpu.MemorySpace.SMEM),  # lambdas
            ],
            out_specs=pl.BlockSpec(memory_space=pltpu.MemorySpace.SMEM),
            scratch_shapes=[
                pltpu.VMEM((1, c_num), jnp.float32),   # per-class sq-dist sum
                pltpu.VMEM((1, c_num), jnp.float32),   # per-class count (histc)
                pltpu.VMEM((1, c_num), jnp.float32),   # ||center_j||^2
            ],
        ),
        compiler_params=pltpu.CompilerParams(
            dimension_semantics=("arbitrary",)),
        cost_estimate=cost,
    )(x, label2d, center, lam)
    return out[0, 0]


def centerloss_ref(x, center, label, lambdas):
    """Pure-JAX reference mirroring the PyTorch forward."""
    c_num = center.shape[0]
    center_exp = center[label]
    count = jnp.zeros((c_num,), jnp.float32).at[label].add(1.0)
    count_exp = count[label]
    b = jnp.sum((x - center_exp) ** 2, axis=1)
    c = b / count_exp
    d = jnp.sum(c) / c_num
    return 0.5 * lambdas * d


if __name__ == "__main__":
    # Small, deterministic shapes: cls_num=8 classes, feature_dim=128, batch=8.
    CLS_NUM = 8
    FEATURE_DIM = 128
    BATCH = 8

    key = jax.random.PRNGKey(0)
    k_center, k_x, k_label = jax.random.split(key, 3)

    center = jax.random.normal(k_center, (CLS_NUM, FEATURE_DIM), jnp.float32)
    x = jax.random.normal(k_x, (BATCH, FEATURE_DIM), jnp.float32)
    label = jax.random.randint(k_label, (BATCH,), 0, CLS_NUM, jnp.int32)
    lambdas = 2.0

    loss = jax.block_until_ready(centerloss(x, center, label, lambdas))
    ref = centerloss_ref(x, center, label, lambdas)
    assert jnp.allclose(loss, ref, rtol=1e-4, atol=1e-5), (loss, ref)

    # Multi-tile case with a padded last tile to exercise the grid,
    # per-class accumulators and row masking.
    N2, D2, C2 = 300, 256, 16
    k2c, k2x, k2l = jax.random.split(jax.random.PRNGKey(1), 3)
    center2 = jax.random.normal(k2c, (C2, D2), jnp.float32)
    x2 = jax.random.normal(k2x, (N2, D2), jnp.float32)
    label2 = jax.random.randint(k2l, (N2,), 0, C2, jnp.int32)
    loss2 = jax.block_until_ready(
        centerloss(x2, center2, label2, 0.5, tile_n=128))
    ref2 = centerloss_ref(x2, center2, label2, 0.5)
    assert jnp.allclose(loss2, ref2, rtol=1e-4, atol=1e-5), (loss2, ref2)

    print("KERNEL_OK")
</pallas_src>

<mosaic_0001>
module attributes {stable_mosaic.version = 11 : i64} {
  func.func @_centerloss_kernel(%arg0: i32, %arg1: memref<8x128xf32, #tpu.memory_space<vmem>>, %arg2: memref<8x1xi32, #tpu.memory_space<vmem>>, %arg3: memref<8x128xf32, #tpu.memory_space<vmem>>, %arg4: memref<1xf32, #tpu.memory_space<smem>>, %arg5: memref<1x1xf32, #tpu.memory_space<smem>>, %arg6: memref<1x8xf32, #tpu.memory_space<vmem>>, %arg7: memref<1x8xf32, #tpu.memory_space<vmem>>, %arg8: memref<1x8xf32, #tpu.memory_space<vmem>>) attributes {dimension_semantics = [#tpu.dimension_semantics<arbitrary>], iteration_bounds = array<i64: 1>, scalar_prefetch = 0 : i64, scratch_operands = 3 : i64, tpu.core_type = #tpu.core_type<tc>, window_params = [{transform_indices = @transform_0, window_bounds = array<i64: 8, 128>}, {transform_indices = @transform_1, window_bounds = array<i64: 8, 1>}, {pipeline_mode = #tpu.pipeline_mode<synchronous>, transform_indices = @transform_2, window_bounds = array<i64: 8, 128>}, {transform_indices = @transform_3, window_bounds = array<i64: 1>}, {transform_indices = @transform_4, window_bounds = array<i64: 1, 1>}]} {
    %c0 = arith.constant 0 : index
    %c0_0 = arith.constant 0 : index
    %0 = vector.load %arg1[%c0, %c0_0] : memref<8x128xf32, #tpu.memory_space<vmem>>, vector<8x128xf32>
    %c0_1 = arith.constant 0 : index
    %c0_2 = arith.constant 0 : index
    %1 = vector.load %arg3[%c0_1, %c0_2] : memref<8x128xf32, #tpu.memory_space<vmem>>, vector<8x128xf32>
    %c0_3 = arith.constant 0 : index
    %c0_4 = arith.constant 0 : index
    %2 = vector.load %arg2[%c0_3, %c0_4] : memref<8x1xi32, #tpu.memory_space<vmem>>, vector<8x1xi32>
    %c0_i32 = arith.constant 0 : i32
    %3 = arith.cmpi eq, %arg0, %c0_i32 : i32
    %4 = arith.extui %3 : i1 to i32
    %c0_i32_5 = arith.constant 0 : i32
    %5 = arith.cmpi ne, %4, %c0_i32_5 : i32
    scf.if %5 {
      %cst_25 = arith.constant 1.000000e+00 : f32
      %49 = vector.broadcast %cst_25 : f32 to vector<1x128xf32>
      %50 = arith.mulf %1, %1 : vector<8x128xf32>
      %cst_26 = arith.constant dense<0.000000e+00> : vector<1x8xf32>
      %51 = tpu.matmul %49, %50, %cst_26 {dimension_numbers = #tpu.dot_dimension_numbers<[1], [1], [0], [0], [0, 0, 1, 0], [], []>} : vector<1x128xf32>, vector<8x128xf32>, vector<1x8xf32> -> vector<1x8xf32>
      %c0_27 = arith.constant 0 : index
      %c0_28 = arith.constant 0 : index
      %52 = vector.load %arg8[%c0_27, %c0_28] : memref<1x8xf32, #tpu.memory_space<vmem>>, vector<1x8xf32>
      tpu.vector_store %arg8[%c0_27, %c0_28], %51 {strides = array<i32>} : memref<1x8xf32, #tpu.memory_space<vmem>>, vector<1x8xf32>,
      %cst_29 = arith.constant 0.000000e+00 : f32
      %53 = vector.broadcast %cst_29 : f32 to vector<1x8xf32>
      %c0_30 = arith.constant 0 : index
      %c0_31 = arith.constant 0 : index
      %54 = vector.load %arg6[%c0_30, %c0_31] : memref<1x8xf32, #tpu.memory_space<vmem>>, vector<1x8xf32>
      tpu.vector_store %arg6[%c0_30, %c0_31], %53 {strides = array<i32>} : memref<1x8xf32, #tpu.memory_space<vmem>>, vector<1x8xf32>,
      %cst_32 = arith.constant 0.000000e+00 : f32
      %55 = vector.broadcast %cst_32 : f32 to vector<1x8xf32>
      %c0_33 = arith.constant 0 : index
      %c0_34 = arith.constant 0 : index
      %56 = vector.load %arg7[%c0_33, %c0_34] : memref<1x8xf32, #tpu.memory_space<vmem>>, vector<1x8xf32>
      tpu.vector_store %arg7[%c0_33, %c0_34], %55 {strides = array<i32>} : memref<1x8xf32, #tpu.memory_space<vmem>>, vector<1x8xf32>,
    } else {
    }
    %6 = tpu.iota {dimensions = array<i32: 0>} : vector<8x1xi32>
    %c8_i32 = arith.constant 8 : i32
    %7 = arith.muli %arg0, %c8_i32 : i32
    %8 = vector.broadcast %7 : i32 to vector<8x1xi32>
    %9 = arith.addi %6, %8 : vector<8x1xi32>
    %c8_i32_6 = arith.constant 8 : i32
    %10 = vector.broadcast %c8_i32_6 : i32 to vector<8x1xi32>
    %11 = arith.cmpi slt, %9, %10 : vector<8x1xi32>
    %12 = tpu.iota {dimensions = array<i32: 1>} : vector<8x8xi32>
    %13 = vector.broadcast %2 : vector<8x1xi32> to vector<8x8xi32>
    %14 = arith.cmpi eq, %13, %12 : vector<8x8xi32>
    %15 = vector.broadcast %11 : vector<8x1xi1> to vector<8x8xi1>
    %16 = arith.andi %14, %15 : vector<8x8xi1>
    %17 = arith.extui %16 : vector<8x8xi1> to vector<8x8xi32>
    %18 = arith.sitofp %17 : vector<8x8xi32> to vector<8x8xf32>
    %cst = arith.constant dense<0.000000e+00> : vector<8x8xf32>
    %19 = tpu.matmul %0, %1, %cst {dimension_numbers = #tpu.dot_dimension_numbers<[1], [1], [0], [0], [0, 0, 1, 0], [], []>} : vector<8x128xf32>, vector<8x128xf32>, vector<8x8xf32> -> vector<8x8xf32>
    %20 = arith.mulf %0, %0 : vector<8x128xf32>
    %cst_7 = arith.constant dense<0.000000e+00> : vector<8xf32>
    %21 = vector.multi_reduction <add>, %20, %cst_7 [1] : vector<8x128xf32> to vector<8xf32>
    %22 = vector.shape_cast %21 : vector<8xf32> to vector<8x1xf32>
    %c0_8 = arith.constant 0 : index
    %c0_9 = arith.constant 0 : index
    %23 = vector.load %arg8[%c0_8, %c0_9] : memref<1x8xf32, #tpu.memory_space<vmem>>, vector<1x8xf32>
    %cst_10 = arith.constant 2.000000e+00 : f32
    %24 = vector.broadcast %cst_10 : f32 to vector<8x8xf32>
    %25 = arith.mulf %24, %19 : vector<8x8xf32>
    %26 = vector.broadcast %23 : vector<1x8xf32> to vector<8x8xf32>
    %27 = arith.subf %26, %25 : vector<8x8xf32>
    %28 = arith.mulf %18, %27 : vector<8x8xf32>
    %cst_11 = arith.constant dense<0.000000e+00> : vector<8xf32>
    %29 = vector.multi_reduction <add>, %28, %cst_11 [1] : vector<8x8xf32> to vector<8xf32>
    %30 = vector.shape_cast %29 : vector<8xf32> to vector<8x1xf32>
    %31 = arith.addf %22, %30 : vector<8x1xf32>
    %cst_12 = arith.constant 0.000000e+00 : f32
    %32 = vector.broadcast %cst_12 : f32 to vector<8x1xf32>
    %33 = arith.select %11, %31, %32 : vector<8x1xi1>, vector<8x1xf32>
    %c0_13 = arith.constant 0 : index
    %c0_14 = arith.constant 0 : index
    %34 = vector.load %arg6[%c0_13, %c0_14] : memref<1x8xf32, #tpu.memory_space<vmem>>, vector<1x8xf32>
    %35 = vector.broadcast %33 : vector<8x1xf32> to vector<8x8xf32>
    %36 = arith.mulf %18, %35 : vector<8x8xf32>
    %cst_15 = arith.constant dense<0.000000e+00> : vector<8xf32>
    %37 = vector.multi_reduction <add>, %36, %cst_15 [0] : vector<8x8xf32> to vector<8xf32>
    %38 = vector.shape_cast %37 : vector<8xf32> to vector<1x8xf32>
    %39 = arith.addf %34, %38 : vector<1x8xf32>
    %c0_16 = arith.constant 0 : index
    %c0_17 = arith.constant 0 : index
    %40 = vector.load %arg6[%c0_16, %c0_17] : memref<1x8xf32, #tpu.memory_space<vmem>>, vector<1x8xf32>
    tpu.vector_store %arg6[%c0_16, %c0_17], %39 {strides = array<i32>} : memref<1x8xf32, #tpu.memory_space<vmem>>, vector<1x8xf32>,
    %c0_18 = arith.constant 0 : index
    %c0_19 = arith.constant 0 : index
    %41 = vector.load %arg7[%c0_18, %c0_19] : memref<1x8xf32, #tpu.memory_space<vmem>>, vector<1x8xf32>
    %cst_20 = arith.constant dense<0.000000e+00> : vector<8xf32>
    %42 = vector.multi_reduction <add>, %18, %cst_20 [0] : vector<8x8xf32> to vector<8xf32>
    %43 = vector.shape_cast %42 : vector<8xf32> to vector<1x8xf32>
    %44 = arith.addf %41, %43 : vector<1x8xf32>
    %c0_21 = arith.constant 0 : index
    %c0_22 = arith.constant 0 : index
    %45 = vector.load %arg7[%c0_21, %c0_22] : memref<1x8xf32, #tpu.memory_space<vmem>>, vector<1x8xf32>
    tpu.vector_store %arg7[%c0_21, %c0_22], %44 {strides = array<i32>} : memref<1x8xf32, #tpu.memory_space<vmem>>, vector<1x8xf32>,
    %c0_i32_23 = arith.constant 0 : i32
    %46 = arith.cmpi eq, %arg0, %c0_i32_23 : i32
    %47 = arith.extui %46 : i1 to i32
    %c0_i32_24 = arith.constant 0 : i32
    %48 = arith.cmpi ne, %47, %c0_i32_24 : i32
    scf.if %48 {
      %c0_25 = arith.constant 0 : index
      %c0_26 = arith.constant 0 : index
      %49 = vector.load %arg7[%c0_25, %c0_26] : memref<1x8xf32, #tpu.memory_space<vmem>>, vector<1x8xf32>
      %cst_27 = arith.constant 0.000000e+00 : f32
      %50 = vector.broadcast %cst_27 : f32 to vector<1x8xf32>
      %51 = arith.cmpf ogt, %49, %50 : vector<1x8xf32>
      %c0_28 = arith.constant 0 : index
      %c0_29 = arith.constant 0 : index
      %52 = vector.load %arg6[%c0_28, %c0_29] : memref<1x8xf32, #tpu.memory_space<vmem>>, vector<1x8xf32>
      %53 = arith.divf %52, %49 : vector<1x8xf32>
      %cst_30 = arith.constant 0.000000e+00 : f32
      %54 = vector.broadcast %cst_30 : f32 to vector<1x8xf32>
      %55 = arith.select %51, %53, %54 : vector<1x8xi1>, vector<1x8xf32>
      %56 = vector.shape_cast %55 : vector<1x8xf32> to vector<1x1x8xf32>
      %cst_31 = arith.constant dense<0.000000e+00> : vector<1xf32>
      %57 = vector.multi_reduction <add>, %56, %cst_31 [1, 2] : vector<1x1x8xf32> to vector<1xf32>
      %58 = vector.shape_cast %57 : vector<1xf32> to vector<1x1x1xf32>
      %59 = vector.extract %58[0, 0, 0] : f32 from vector<1x1x1xf32>
      %cst_32 = arith.constant 8.000000e+00 : f32
      %60 = arith.divf %59, %cst_32 : f32
      %c0_33 = arith.constant 0 : index
      %61 = memref.load %arg4[%c0_33] : memref<1xf32, #tpu.memory_space<smem>>
      %cst_34 = arith.constant 5.000000e-01 : f32
      %62 = arith.mulf %cst_34, %61 : f32
      %63 = arith.mulf %62, %60 : f32
      %c0_35 = arith.constant 0 : index
      %c0_36 = arith.constant 0 : index
      %64 = memref.load %arg5[%c0_35, %c0_36] : memref<1x1xf32, #tpu.memory_space<smem>>
      memref.store %63, %arg5[%c0_35, %c0_36] : memref<1x1xf32, #tpu.memory_space<smem>>
    } else {
    }
    return
  }
  func.func @transform_0(%arg0: i32) -> (i32, i32) {
    %c0_i32 = arith.constant 0 : i32
    %c0_i32_0 = arith.constant 0 : i32
    return %arg0, %c0_i32 : i32, i32
  }
  func.func @transform_1(%arg0: i32) -> (i32, i32) {
    %c0_i32 = arith.constant 0 : i32
    %c0_i32_0 = arith.constant 0 : i32
    return %arg0, %c0_i32 : i32, i32
  }
  func.func @transform_2(%arg0: i32) -> (i32, i32) {
    %c0_i32 = arith.constant 0 : i32
    %c0_i32_0 = arith.constant 0 : i32
    %c0_i32_1 = arith.constant 0 : i32
    return %c0_i32, %c0_i32_0 : i32, i32
  }
  func.func @transform_3(%arg0: i32) -> i32 {
    %c0_i32 = arith.constant 0 : i32
    %c0_i32_0 = arith.constant 0 : i32
    return %c0_i32 : i32
  }
  func.func @transform_4(%arg0: i32) -> (i32, i32) {
    %c0_i32 = arith.constant 0 : i32
    %c0_i32_0 = arith.constant 0 : i32
    %c0_i32_1 = arith.constant 0 : i32
    return %c0_i32, %c0_i32_0 : i32, i32
  }
}

</mosaic_0001>

<bundles_post_ra>
// kernel: tpu_custom_call.1
= control target key start
LH: loop header
LB: loop body
LE: loop exit
PB: predicated region body
PF: predicated region fallthrough
CT: control target
= control target key end

     0   :  { %10 = vsyncpa [#allocation7], 0  ;;  %s314_s0 = inlined_call_operand.vmem [shape: f32[8,128], index: 0, kind: input, shape index: {}]   ;;  %s315_s1 = inlined_call_operand.vmem [shape: s32[8,1], index: 1, kind: input, shape index: {}]   ;;  %s316_s2 = inlined_call_operand.hbm [shape: f32[8,128], index: 2, kind: input, shape index: {}]   ;;  %s317_s3 = inlined_call_operand.<no memory space> [shape: f32[1], index: 3, kind: input, shape index: {}]   ;;  %s318_s4 = inlined_call_operand.hbm [shape: f32[1,1], index: 4, kind: output, shape index: {}]  }
   0x1   :  { %11 = vsyncpa [#allocation8], 0  ;;  %s21_s17 = sshll.u32 %s316_s2, 4  ;;  %s259_s18 = smov [#allocation6]   ;;  %s22_s17 = int_to_ptr.hbm [resolvable:$true] %s21_s17 }
   0x2   :  { %s23_s19 = sshll.u32 %s259_s18, 4  ;;  %s24_s19 = int_to_ptr.vmem [resolvable:$true] %s23_s19 }
   0x3   :  { %26 = dma.hbm_to_vmem [thread:$0]  %s22_s17, 128, %s24_s19, [#allocation7]  }
   0x4   :  { %255 = dma.done.wait [#allocation7], 128  }
   0x5   :  { %256 = vsyncadd [#allocation7], 4294967168  ;;  %vm61_vm0 = vcmask 57344   ;;  %v260_v0 = vmov 0   ;;  %v261_v1 = vmov 0.0   ;;  %v34_v2 = vld [vmem:[#allocation6] sm:$0xff]  ;;  %v71_v7 = vlaneseq }
   0x6   :  { %213 = vset.pattern.permute.xlu0 %v260_v0  ;;  %63 = vst.msk [vmem:[#allocation2] sm:$0x1] %vm61_vm0, %v261_v1  ;;  %v35_v3 = vld [vmem:[%s315_s1] sm:$0xff]  ;;  %v40_v4 = vmul.f32 %v34_v2, %v34_v2  ;;  %97 = vmatpush.xpose.msra.mxu1 %v34_v2  ;;  %v262_v6 = vmov 1.0   ;;  %vm112_vm1 = vcmask 64512   ;;  %v263_v56 = vmov 8.0  }
   0x7   :  { %64 = vst.msk [vmem:[#allocation3] sm:$0x1] %vm61_vm0, %v261_v1  ;;  %74 = vperm.xlu0 %213, %v35_v3   ;;  %v33_v5 = vld [vmem:[%s314_s0] sm:$0xff]  ;;  %v72_v9 = vand.u32 127, %v71_v7  ;;  %s182_s23 = smul.f32 0.5, %s317_s3  ;;  %s191_s27 = sshll.u32 %s318_s4, 4  ;;  %s192_s27 = int_to_ptr.hbm [resolvable:$true] %s191_s27 }
   0x8   :  { %56 = vmatpush.xpose.msra.mxu0 %v40_v4  ;;  %v102_v8 = vmul.f32 %v33_v5, %v33_v5  ;;  %s264_s5 = smov [#allocation9]  }
   0x9   :  { %98 = vmatmul.f32.vlgmr.msra.gmra.mxu1 %v33_v5 }
   0xb   :  { %57 = vmatmul.f32.vlgmr.msra.gmra.mxu0 %v262_v6 }
   0xd   :  { %v118_v42 = vld [vmem:[#allocation2] sm:$0x1] }
   0xe   :  { %v130_v18 = vld [vmem:[#allocation3] sm:$0x1] }
  0x31   :  { %103 = vadd.xlane.f32.xlu0 %v102_v8 }
  0x79   :  { %v75_v10 = vpop.permute.xlu0 %74 }
  0x7a   :  { %vm76_vm2 = vcmp.eq.s32.totalorder %v75_v10, %v72_v9 }
  0x7b   :  { %v202_v11 = vsel %vm76_vm2, 1.0, %v261_v1 }
  0x7c   :  { %v131_v12 = vsel %vm112_vm1, %v202_v11, 0.0 }
  0x7d   :  { %v132_v13 = vrot.slane %v131_v12, 4 }
  0x7f   :  { %v133_v14 = vadd.f32 %v132_v13, %v131_v12 }
  0x81   :  { %v134_v15 = vrot.slane %v133_v14, 2 }
  0x83   :  { %v135_v16 = vadd.f32 %v134_v15, %v133_v14 }
  0x85   :  { %v136_v17 = vrot.slane %v135_v16, 1 }
  0x86   :  { %v99_v22 = vpop.f32.mrf.mxu1 }
  0x87   :  { %v137_v19 = vadd.f32 %v136_v17, %v135_v16  ;;  %v106_v23 = vmul.f32 2.0, %v99_v22 }
  0x88   :  { %v58_v20 = vpop.f32.mrf.mxu0 }
  0x89   :  { %v138_v21 = vadd.f32 %v137_v19, %v130_v18  ;;  %62 = vst.msk [vmem:[#allocation4] sm:$0x1] %vm61_vm0, %v58_v20 }
  0x8b   :  { %139 = vst.msk [vmem:[#allocation3] sm:$0x1] %vm61_vm0, %v138_v21 }
  0x90   :  { %v214_v24 = vld [vmem:[#allocation4] ss:$0 sm:$0xff] }
  0x91   :  { %v110_v25 = vsub.f32 %v214_v24, %v106_v23 }
  0x92   :  { %v143_v28 = vld [vmem:[#allocation3] sm:$0x1] }
  0x93   :  { %v111_v26 = vmul.f32 %v202_v11, %v110_v25  ;;  %215 = vrcp.f32 %v143_v28  ;;  %vm151_vm3 = vweird.f32 %v143_v28  ;;  %v157_v46 = vand.u32 2147483648, %v143_v28 }
  0x94   :  { %v155_v48 = vand.u32 2147483647, %v143_v28  ;;  %vm144_vm7 = vcmp.gt.f32.partialorder %v143_v28, 0.0  ;;  %217 = vrcp.f32 %v263_v56 }
  0x95   :  { %v113_v27 = vsel %vm112_vm1, %v111_v26, 0.0  ;;  %v158_v49 = vor.u32 1.1754944e-38, %v157_v46 }
  0x96   :  { %114 = vadd.xlane.f32.xlu1 %v113_v27  ;;  %vm156_vm6 = vcmp.eq.f32.partialorder %v155_v48, 8.507059e+37 }
  0x99   :  { %v216_v33 = vpop.eup %215 }
  0x9a   :  { %v147_v37 = vmul.f32 %v216_v33, %v143_v28  ;;  %vm152_vm4 = vweird.f32 %v216_v33  ;;  %v218_v57 = vpop.eup %217 }
  0x9b   :  { %vm153_vm5 = vmor %vm151_vm3, %vm152_vm4  ;;  %v173_v58 = vmul.f32 8.0, %v218_v57  ;;  %vm177_vm8 = vweird.f32 %v218_v57 }
  0x9c   :  { %v148_v40 = vsub.f32 1.0, %v147_v37 }
  0x9d   :  { %v174_v59 = vsub.f32 1.0, %v173_v58 }
  0x9e   :  { %v149_v44 = vmul.f32 %v216_v33, %v148_v40 }
  0x9f   :  { %v175_v63 = vmul.f32 %v218_v57, %v174_v59 }
  0xa0   :  { %v150_v47 = vadd.f32 %v216_v33, %v149_v44 }
  0xa1   :  { %v176_v2 = vadd.f32 %v218_v57, %v175_v63 }
  0xa2   :  { %v154_v50 = vsel %vm153_vm5, %v216_v33, %v150_v47 }
  0xa3   :  { %v159_v52 = vsel %vm156_vm6, %v158_v49, %v154_v50  ;;  %v178_v5 = vsel %vm177_vm8, %v218_v57, %v176_v2 }
  0xa4   :  { %v104_v29 = vpop.xlane.xlu0 %103 }
 0x109   :  { %v115_v30 = vpop.xlane.xlu1 %114 }
 0x10a   :  { %v116_v31 = vadd.f32 %v115_v30, %v104_v29 }
 0x10c   :  { %v119_v32 = vmul.f32 %v202_v11, %v116_v31 }
 0x10e   :  { %v120_v34 = vsel %vm112_vm1, %v119_v32, 0.0 }
 0x10f   :  { %v121_v35 = vrot.slane %v120_v34, 4 }
 0x111   :  { %v122_v36 = vadd.f32 %v121_v35, %v120_v34 }
 0x113   :  { %v123_v38 = vrot.slane %v122_v36, 2 }
 0x115   :  { %v124_v39 = vadd.f32 %v123_v38, %v122_v36 }
 0x117   :  { %v125_v41 = vrot.slane %v124_v39, 1 }
 0x119   :  { %v126_v43 = vadd.f32 %v125_v41, %v124_v39 }
 0x11b   :  { %v127_v45 = vadd.f32 %v126_v43, %v118_v42 }
 0x11d   :  { %129 = vst.msk [vmem:[#allocation2] sm:$0x1] %vm61_vm0, %v127_v45 }
 0x124   :  { %v145_v51 = vld [vmem:[#allocation2] sm:$0x1] }
 0x125   :  { %v160_v53 = vmul.f32 %v159_v52, %v145_v51 }
 0x127   :  { %v161_v54 = vsel %vm144_vm7, %v160_v53, 0.0 }
 0x128   :  { %v162_v55 = vsel %vm61_vm0, %v161_v54, 0.0 }
 0x129   :  { %163 = vadd.xlane.f32.xlu1 %v162_v55 }
 0x19c   :  { %v164_v60 = vpop.xlane.xlu1 %163 }
 0x19d   :  { %v165_v61 = vrot.slane %v164_v60, 4 }
 0x19f   :  { %v166_v62 = vadd.f32 %v165_v61, %v164_v60 }
 0x1a1   :  { %v167_v0 = vrot.slane %v166_v62, 2 }
 0x1a3   :  { %v168_v1 = vadd.f32 %v167_v0, %v166_v62 }
 0x1a5   :  { %v169_v3 = vrot.slane %v168_v1, 1 }
 0x1a7   :  { %v170_v4 = vadd.f32 %v169_v3, %v168_v1 }
 0x1a9   :  { %203 = vpush %v170_v4 }
 0x1aa   :  { %205 = vpush %v178_v5 }
 0x1da   :  { %s204_s24 = spop %203 }
 0x1db   :  { %s206_s28 = spop %205 }
 0x1dc   :  { %s180_s29 = smul.f32 %s206_s28, %s204_s24 }
 0x1de   :  { %s183_s30 = smul.f32 %s182_s23, %s180_s29 }
 0x1e0   :  { %185 = sst [smem:[#allocation9]] %s183_s30 }
 0x1e1   :  { %194 = dma.smem_to_hbm %s264_s5, 16, %s192_s27, [#allocation8]  }
 0x1e2   :  { %257 = dma.done.wait [#allocation8], 16  }
 0x1e3   :  { %258 = vsyncadd [#allocation8], 4294967280 }
 0x1e4   :  { %199 = sfence }
 0x1e5   :  { %200 = vsyncpa [#allocation7], 1 }
 0x1e6   :  { %201 = vsyncpa [#allocation8], 1 }

</bundles_post_ra>
